<compile_context>
chip_gen: v7x
topology: tpu7x:2x2x1
jax: 0.10.0
libtpu: 0.0.40
codegen_flags: <defaults>
</compile_context>

<pallas_src>
import functools

import jax
import jax.numpy as jnp
from jax import lax
from jax.experimental import pallas as pl
from jax.experimental.pallas import tpu as pltpu

BN_EPS = 1e-5
LRELU_SLOPE = 0.01           # nn.LeakyReLU() default negative_slope
MATMUL_DTYPE = jnp.bfloat16  # MXU input dtype (accumulation is f32)


# ----------------------------------------------------------------------------
# Pallas kernels
# ----------------------------------------------------------------------------
def _conv_stats_kernel(p_ref, w_ref, st_ref):
    """Phase 1 (per M-tile): conv-as-matmul; emit ONLY per-channel (sum, sumsq).

    p_ref:  (TM, Kp) bf16 patches tile
    w_ref:  (Kp, Cp) bf16 weight (constant index_map -> stays resident)
    st_ref: (8,  Cp) f32 per-tile stats block (row 0 = sum, row 1 = sumsq)
    """
    y = jnp.dot(p_ref[...], w_ref[...], preferred_element_type=jnp.float32)
    # Column sums packed into one (8, Cp) register tile -> single full-block
    # store (no zeros-fill + masked 1-row stores).
    # NOTE(perf): if a bundle dump shows VALU pressure at large TM, these
    # column sums can be moved onto the otherwise idle MXU (ones(8,TM) @ y).
    s0 = jnp.sum(y, axis=0, keepdims=True)
    s1 = jnp.sum(y * y, axis=0, keepdims=True)
    st_ref[...] = jnp.concatenate(
        [s0, s1, jnp.zeros((6, y.shape[1]), jnp.float32)], axis=0)


def _conv_bn_lrelu_kernel(cout, p_ref, w_ref, scale_ref, shift_ref, o_ref):
    """Phase 2 (per M-tile): recompute the conv tile (no HBM intermediate),
    apply folded BatchNorm (y*scale + shift) + LeakyReLU, store only the real
    output channels."""
    y = jnp.dot(p_ref[...], w_ref[...], preferred_element_type=jnp.float32)
    out = y * scale_ref[...] + shift_ref[...]
    out = jnp.where(out > 0, out, LRELU_SLOPE * out)
    o_ref[...] = out[:, :cout].astype(o_ref.dtype)


# ----------------------------------------------------------------------------
# Helpers
# ----------------------------------------------------------------------------
def _round_up(x, m):
    return (x + m - 1) // m * m


def _choose_tm(m, kp, cp, cout, budget_bytes=12 << 20, tm_cap=2048):
    """Largest 16-multiple M-tile that fits a conservative VMEM budget (safe on
    v5e's 16 MiB default scoped limit; vmem_limit_bytes is passed explicitly)."""
    # Resident across the grid: double-buffered bf16 weight + scale/shift +
    # double-buffered stats blocks.
    # TODO(synk): for very large Cin*k^3 x Cout (resident weight >> budget) add
    # a K grid axis marked "arbitrary" with an f32 accumulator (or single-buffer
    # the constant weight spec with pipeline_mode=pl.Buffered(1)) instead of
    # shrinking TM -- matters most on v7x's 64 MiB VMEM.
    resident = 2 * kp * cp * 2 + 4 * cp * 4 + 2 * 8 * cp * 4
    # Per M-row: double-buffered bf16 patch tile + double-buffered f32 output
    # rows (phase 2) + in-kernel f32 temporaries (y, y*y).
    per_row = 2 * (kp * 2 + cout * 4) + 2 * cp * 4
    tm = (budget_bytes - resident) // per_row
    tm = max(16, min(int(tm), tm_cap))
    tm = min(tm, _round_up(m, 16))
    tm = max(16, (tm // 16) * 16)
    # v7x has 2 TensorCores: make sure the "parallel" grid axis has >= 2 steps.
    if m > 16 and _round_up(m, tm) // tm < 2:
        tm = max(16, _round_up(pl.cdiv(m, 2), 16))
    return tm


def _vmem_limit_bytes(tm, kp, cp, cout):
    """Explicit scoped-VMEM request sized from the actual 2-buffer footprint."""
    footprint = (2 * kp * cp * 2        # double-buffered bf16 weight
                 + 2 * tm * kp * 2      # double-buffered bf16 patch tiles
                 + 2 * tm * cout * 4    # double-buffered f32 output tiles
                 + 2 * 8 * cp * 4       # double-buffered stats tiles
                 + 4 * cp * 4           # scale / shift
                 + 2 * tm * cp * 4)     # in-kernel f32 temporaries (y, y*y)
    return int(max(16 << 20, min(int(footprint * 1.5) + (2 << 20), 32 << 20)))


def _im2col_channels_last(x, k, s):
    """im2col for an NCDHW input, VALID padding, stride s.

    Returns a bf16 patch matrix with rows ordered (N, Do, Ho, Wo) and columns
    ordered (kd, kh, kw, Cin).  The matching weight layout is produced by
    _weight_matrix(), so no full-size patch-matrix transpose is needed -- the
    only big layout op is the NCDHW -> NDHWC transpose of the (smaller) input.
    """
    # TODO(synk): move this gather into the Pallas kernel (k^3 accumulated small
    # matmuls over a channels-last input slab per grid step, or scalar-prefetched
    # offsets) so the ~(k/s)^3-times-larger patch matrix is never materialized
    # in HBM -- the largest remaining HBM-traffic reduction on every generation.
    N, C, D, H, W = x.shape
    Do = (D - k) // s + 1
    Ho = (H - k) // s + 1
    Wo = (W - k) // s + 1
    x_cl = jnp.transpose(x, (0, 2, 3, 4, 1)).astype(MATMUL_DTYPE)  # (N,D,H,W,C)
    cols = []
    for dz in range(k):
        for dy in range(k):
            for dx in range(k):
                cols.append(x_cl[:, dz:dz + s * Do:s,
                                 dy:dy + s * Ho:s,
                                 dx:dx + s * Wo:s, :])
    p = jnp.stack(cols, axis=4)                     # (N, Do, Ho, Wo, k^3, Cin)
    return p.reshape(N * Do * Ho * Wo, k * k * k * C), (N, Do, Ho, Wo)


def _weight_matrix(weight, kp, cp):
    """(Cout, Cin, kd, kh, kw) -> bf16 (Kp, Cp) with row order (kd, kh, kw, Cin)
    to match the patch column order; zero padding keeps padded K rows / Cout
    lanes exactly zero."""
    cout, cin, k = weight.shape[0], weight.shape[1], weight.shape[2]
    K = cin * k * k * k
    w = jnp.transpose(weight.astype(jnp.float32), (2, 3, 4, 1, 0)).reshape(K, cout)
    return jnp.pad(w, ((0, kp - K), (0, cp - cout))).astype(MATMUL_DTYPE)


# ----------------------------------------------------------------------------
# Wrapper mirroring DiscriminatorBlock.forward (training-mode BatchNorm)
# ----------------------------------------------------------------------------
@functools.partial(jax.jit, static_argnames=("k", "s"))
def discriminator_block(x, weight, bias, gamma, beta, k, s):
    """x: (N, Cin, D, H, W); weight: (Cout, Cin, k, k, k).
    Returns (N, Cout, Do, Ho, Wo) in float32.

    `bias` is accepted for interface parity with nn.Conv3d but unused: a conv
    bias is exactly cancelled by the training-mode BatchNorm mean subtraction.
    NOTE: the MXU is fed bf16 (f32 accumulation) -- a deliberate precision
    choice; BN statistics / normalization / LeakyReLU stay in f32.
    """
    del bias
    cout = weight.shape[0]
    patches, (N, Do, Ho, Wo) = _im2col_channels_last(x, k, s)
    M, K = patches.shape

    cp = _round_up(cout, 128)   # lane-dense MXU output width (weight only)
    kp = _round_up(K, 128)      # lane-dense contraction width
    tm = _choose_tm(M, kp, cp, cout)
    mp = _round_up(M, tm)
    grid = mp // tm
    vmem_limit = _vmem_limit_bytes(tm, kp, cp, cout)

    p_pad = jnp.pad(patches, ((0, mp - M), (0, kp - K)))        # bf16
    w2d = _weight_matrix(weight, kp, cp)                        # bf16
    gamma_p = jnp.pad(gamma.astype(jnp.float32), (0, cp - cout))
    beta_p = jnp.pad(beta.astype(jnp.float32), (0, cp - cout))

    # ---- Phase 1: per-tile conv matmul -> per-channel partial stats only -----
    stats = pl.pallas_call(
        _conv_stats_kernel,
        grid=(grid,),
        in_specs=[
            pl.BlockSpec((tm, kp), lambda i: (i, 0)),   # patches tile
            pl.BlockSpec((kp, cp), lambda i: (0, 0)),   # weight (resident)
        ],
        out_specs=pl.BlockSpec((8, cp), lambda i: (i, 0)),
        out_shape=jax.ShapeDtypeStruct((grid * 8, cp), jnp.float32),
        compiler_params=pltpu.CompilerParams(
            dimension_semantics=("parallel",),
            vmem_limit_bytes=vmem_limit),
    )(p_pad, w2d)

    # ---- Tiny per-channel finalize in plain JAX (hoisted out of the tiles) ---
    # Zero-padded M rows and K rows contribute exactly 0 to the sums; divide by
    # the TRUE M.
    # TODO(synk): E[x^2]-E[x]^2 in f32 can cancel for very large M / magnitudes;
    # switch to a shifted / Welford accumulation if that regime matters.
    stats = stats.reshape(grid, 8, cp)
    ch_sum = jnp.sum(stats[:, 0, :], axis=0)
    ch_ssq = jnp.sum(stats[:, 1, :], axis=0)
    inv_m = 1.0 / float(M)
    mean = ch_sum * inv_m
    var = jnp.maximum(ch_ssq * inv_m - mean * mean, 0.0)
    inv_std = lax.rsqrt(var + BN_EPS)
    scale = (gamma_p * inv_std)[None, :]                    # (1, Cp)
    shift = (beta_p - mean * gamma_p * inv_std)[None, :]    # (1, Cp)

    # ---- Phase 2: recompute conv tile, BN + LeakyReLU, store real channels ---
    out_p = pl.pallas_call(
        functools.partial(_conv_bn_lrelu_kernel, cout),
        grid=(grid,),
        in_specs=[
            pl.BlockSpec((tm, kp), lambda i: (i, 0)),   # patches tile (again)
            pl.BlockSpec((kp, cp), lambda i: (0, 0)),   # weight (resident)
            pl.BlockSpec((1, cp), lambda i: (0, 0)),    # scale (resident)
            pl.BlockSpec((1, cp), lambda i: (0, 0)),    # shift (resident)
        ],
        out_specs=pl.BlockSpec((tm, cout), lambda i: (i, 0)),
        out_shape=jax.ShapeDtypeStruct((mp, cout), jnp.float32),
        compiler_params=pltpu.CompilerParams(
            dimension_semantics=("parallel",),
            vmem_limit_bytes=vmem_limit),
    )(p_pad, w2d, scale, shift)

    # Channels-last -> NCDHW (only because the PyTorch module is NCDHW).
    # TODO(synk): in a stack of DiscriminatorBlocks stay channels-last
    # end-to-end (or have phase 2 emit (N, Cout, Do*Ho*Wo) directly) and drop
    # this extra HBM pass from the hot path.
    out = out_p[:M].reshape(N, Do, Ho, Wo, cout)
    return out.transpose(0, 4, 1, 2, 3)


# ----------------------------------------------------------------------------
# Pure-JAX reference (for verification)
# ----------------------------------------------------------------------------
def reference(x, weight, bias, gamma, beta, k, s):
    y = lax.conv_general_dilated(
        x.astype(jnp.float32), weight.astype(jnp.float32),
        window_strides=(s, s, s), padding="VALID",
        dimension_numbers=("NCDHW", "OIDHW", "NCDHW"),
        precision=lax.Precision.HIGHEST)
    y = y + bias[None, :, None, None, None]
    mean = jnp.mean(y, axis=(0, 2, 3, 4), keepdims=True)
    var = jnp.mean((y - mean) ** 2, axis=(0, 2, 3, 4), keepdims=True)
    y_hat = (y - mean) * lax.rsqrt(var + BN_EPS)
    out = gamma[None, :, None, None, None] * y_hat + beta[None, :, None, None, None]
    return jnp.where(out > 0, out, LRELU_SLOPE * out)


if __name__ == "__main__":
    # Small shapes consistent with a Conv3d discriminator block.
    N, Cin, D, H, W = 2, 4, 8, 8, 8
    Cout, k, s = 8, 3, 2

    key = jax.random.PRNGKey(0)
    kx, kw, kb, kg, kbe = jax.random.split(key, 5)
    x = jax.random.normal(kx, (N, Cin, D, H, W), dtype=jnp.float32)
    weight = 0.1 * jax.random.normal(kw, (Cout, Cin, k, k, k), dtype=jnp.float32)
    bias = 0.05 * jax.random.normal(kb, (Cout,), dtype=jnp.float32)
    gamma = 1.0 + 0.1 * jax.random.normal(kg, (Cout,), dtype=jnp.float32)
    beta = 0.1 * jax.random.normal(kbe, (Cout,), dtype=jnp.float32)

    out = discriminator_block(x, weight, bias, gamma, beta, k=k, s=s)
    out = jax.block_until_ready(out)

    # Apples-to-apples reference: the kernel feeds the MXU in bf16 (f32 accum),
    # so compare against the f32 reference evaluated on bf16-rounded conv inputs.
    xq = x.astype(jnp.bfloat16).astype(jnp.float32)
    wq = weight.astype(jnp.bfloat16).astype(jnp.float32)
    ref = jax.block_until_ready(reference(xq, wq, bias, gamma, beta, k, s))

    Do, Ho, Wo = (D - k) // s + 1, (H - k) // s + 1, (W - k) // s + 1
    assert out.shape == ref.shape == (N, Cout, Do, Ho, Wo)
    max_err = jnp.max(jnp.abs(out - ref))
    assert jnp.allclose(out, ref, atol=1e-3, rtol=1e-3), \
        f"max abs err = {max_err}"

    print("KERNEL_OK")
</pallas_src>

<mosaic_0001>
module attributes {stable_mosaic.version = 11 : i64} {
  func.func @_conv_stats_kernel(%arg0: i32, %arg1: memref<32x128xbf16, #tpu.memory_space<vmem>>, %arg2: memref<128x128xbf16, #tpu.memory_space<vmem>>, %arg3: memref<8x128xf32, #tpu.memory_space<vmem>>) attributes {dimension_semantics = [#tpu.dimension_semantics<parallel>], iteration_bounds = array<i64: 2>, scalar_prefetch = 0 : i64, scratch_operands = 0 : i64, tpu.core_type = #tpu.core_type<tc>, window_params = [{transform_indices = @transform_0, window_bounds = array<i64: 32, 128>}, {pipeline_mode = #tpu.pipeline_mode<synchronous>, transform_indices = @transform_1, window_bounds = array<i64: 128, 128>}, {transform_indices = @transform_2, window_bounds = array<i64: 8, 128>}]} {
    %c0 = arith.constant 0 : index
    %c0_0 = arith.constant 0 : index
    %0 = vector.load %arg1[%c0, %c0_0] : memref<32x128xbf16, #tpu.memory_space<vmem>>, vector<32x128xbf16>
    %c0_1 = arith.constant 0 : index
    %c0_2 = arith.constant 0 : index
    %1 = vector.load %arg2[%c0_1, %c0_2] : memref<128x128xbf16, #tpu.memory_space<vmem>>, vector<128x128xbf16>
    %cst = arith.constant dense<0.000000e+00> : vector<32x128xf32>
    %2 = tpu.matmul %0, %1, %cst {dimension_numbers = #tpu.dot_dimension_numbers<[1], [0], [0], [1], [0, 0, 1, 1], [], []>} : vector<32x128xbf16>, vector<128x128xbf16>, vector<32x128xf32> -> vector<32x128xf32>
    %cst_3 = arith.constant dense<0.000000e+00> : vector<128xf32>
    %3 = vector.multi_reduction <add>, %2, %cst_3 [0] : vector<32x128xf32> to vector<128xf32>
    %4 = vector.shape_cast %3 : vector<128xf32> to vector<1x128xf32>
    %5 = arith.mulf %2, %2 : vector<32x128xf32>
    %cst_4 = arith.constant dense<0.000000e+00> : vector<128xf32>
    %6 = vector.multi_reduction <add>, %5, %cst_4 [0] : vector<32x128xf32> to vector<128xf32>
    %7 = vector.shape_cast %6 : vector<128xf32> to vector<1x128xf32>
    %cst_5 = arith.constant 0.000000e+00 : f32
    %8 = vector.broadcast %cst_5 : f32 to vector<6x128xf32>
    %9 = tpu.concatenate %4, %7, %8 in 0 : vector<1x128xf32>, vector<1x128xf32>, vector<6x128xf32> -> vector<8x128xf32>
    %c0_6 = arith.constant 0 : index
    %c0_7 = arith.constant 0 : index
    %10 = vector.load %arg3[%c0_6, %c0_7] : memref<8x128xf32, #tpu.memory_space<vmem>>, vector<8x128xf32>
    tpu.vector_store %arg3[%c0_6, %c0_7], %9 {strides = array<i32>} : memref<8x128xf32, #tpu.memory_space<vmem>>, vector<8x128xf32>,
    return
  }
  func.func @transform_0(%arg0: i32) -> (i32, i32) {
    %c0_i32 = arith.constant 0 : i32
    %c0_i32_0 = arith.constant 0 : i32
    return %arg0, %c0_i32 : i32, i32
  }
  func.func @transform_1(%arg0: i32) -> (i32, i32) {
    %c0_i32 = arith.constant 0 : i32
    %c0_i32_0 = arith.constant 0 : i32
    %c0_i32_1 = arith.constant 0 : i32
    return %c0_i32, %c0_i32_0 : i32, i32
  }
  func.func @transform_2(%arg0: i32) -> (i32, i32) {
    %c0_i32 = arith.constant 0 : i32
    %c0_i32_0 = arith.constant 0 : i32
    return %arg0, %c0_i32 : i32, i32
  }
}

module attributes {stable_mosaic.version = 11 : i64} {
  func.func @_conv_bn_lrelu_kernel(%arg0: i32, %arg1: memref<32x128xbf16, #tpu.memory_space<vmem>>, %arg2: memref<128x128xbf16, #tpu.memory_space<vmem>>, %arg3: memref<1x128xf32, #tpu.memory_space<vmem>>, %arg4: memref<1x128xf32, #tpu.memory_space<vmem>>, %arg5: memref<32x8xf32, #tpu.memory_space<vmem>>) attributes {dimension_semantics = [#tpu.dimension_semantics<parallel>], iteration_bounds = array<i64: 2>, scalar_prefetch = 0 : i64, scratch_operands = 0 : i64, tpu.core_type = #tpu.core_type<tc>, window_params = [{transform_indices = @transform_0, window_bounds = array<i64: 32, 128>}, {pipeline_mode = #tpu.pipeline_mode<synchronous>, transform_indices = @transform_1, window_bounds = array<i64: 128, 128>}, {pipeline_mode = #tpu.pipeline_mode<synchronous>, transform_indices = @transform_2, window_bounds = array<i64: 1, 128>}, {pipeline_mode = #tpu.pipeline_mode<synchronous>, transform_indices = @transform_3, window_bounds = array<i64: 1, 128>}, {transform_indices = @transform_4, window_bounds = array<i64: 32, 8>}]} {
    %c0 = arith.constant 0 : index
    %c0_0 = arith.constant 0 : index
    %0 = vector.load %arg1[%c0, %c0_0] : memref<32x128xbf16, #tpu.memory_space<vmem>>, vector<32x128xbf16>
    %c0_1 = arith.constant 0 : index
    %c0_2 = arith.constant 0 : index
    %1 = vector.load %arg2[%c0_1, %c0_2] : memref<128x128xbf16, #tpu.memory_space<vmem>>, vector<128x128xbf16>
    %cst = arith.constant dense<0.000000e+00> : vector<32x128xf32>
    %2 = tpu.matmul %0, %1, %cst {dimension_numbers = #tpu.dot_dimension_numbers<[1], [0], [0], [1], [0, 0, 1, 1], [], []>} : vector<32x128xbf16>, vector<128x128xbf16>, vector<32x128xf32> -> vector<32x128xf32>
    %c0_3 = arith.constant 0 : index
    %c0_4 = arith.constant 0 : index
    %3 = vector.load %arg3[%c0_3, %c0_4] : memref<1x128xf32, #tpu.memory_space<vmem>>, vector<1x128xf32>
    %4 = vector.broadcast %3 : vector<1x128xf32> to vector<32x128xf32>
    %5 = arith.mulf %2, %4 : vector<32x128xf32>
    %c0_5 = arith.constant 0 : index
    %c0_6 = arith.constant 0 : index
    %6 = vector.load %arg4[%c0_5, %c0_6] : memref<1x128xf32, #tpu.memory_space<vmem>>, vector<1x128xf32>
    %7 = vector.broadcast %6 : vector<1x128xf32> to vector<32x128xf32>
    %8 = arith.addf %5, %7 : vector<32x128xf32>
    %cst_7 = arith.constant 0.000000e+00 : f32
    %9 = vector.broadcast %cst_7 : f32 to vector<32x128xf32>
    %10 = arith.cmpf ogt, %8, %9 : vector<32x128xf32>
    %cst_8 = arith.constant 0.00999999977 : f32
    %11 = vector.broadcast %cst_8 : f32 to vector<32x128xf32>
    %12 = arith.mulf %11, %8 : vector<32x128xf32>
    %13 = arith.select %10, %8, %12 : vector<32x128xi1>, vector<32x128xf32>
    %14 = vector.extract_strided_slice %13 {offsets = [0, 0], sizes = [32, 8], strides = [1, 1]} : vector<32x128xf32> to vector<32x8xf32>
    %c0_9 = arith.constant 0 : index
    %c0_10 = arith.constant 0 : index
    %15 = vector.load %arg5[%c0_9, %c0_10] : memref<32x8xf32, #tpu.memory_space<vmem>>, vector<32x8xf32>
    tpu.vector_store %arg5[%c0_9, %c0_10], %14 {strides = array<i32>} : memref<32x8xf32, #tpu.memory_space<vmem>>, vector<32x8xf32>,
    return
  }
  func.func @transform_0(%arg0: i32) -> (i32, i32) {
    %c0_i32 = arith.constant 0 : i32
    %c0_i32_0 = arith.constant 0 : i32
    return %arg0, %c0_i32 : i32, i32
  }
  func.func @transform_1(%arg0: i32) -> (i32, i32) {
    %c0_i32 = arith.constant 0 : i32
    %c0_i32_0 = arith.constant 0 : i32
    %c0_i32_1 = arith.constant 0 : i32
    return %c0_i32, %c0_i32_0 : i32, i32
  }
  func.func @transform_2(%arg0: i32) -> (i32, i32) {
    %c0_i32 = arith.constant 0 : i32
    %c0_i32_0 = arith.constant 0 : i32
    %c0_i32_1 = arith.constant 0 : i32
    return %c0_i32, %c0_i32_0 : i32, i32
  }
  func.func @transform_3(%arg0: i32) -> (i32, i32) {
    %c0_i32 = arith.constant 0 : i32
    %c0_i32_0 = arith.constant 0 : i32
    %c0_i32_1 = arith.constant 0 : i32
    return %c0_i32, %c0_i32_0 : i32, i32
  }
  func.func @transform_4(%arg0: i32) -> (i32, i32) {
    %c0_i32 = arith.constant 0 : i32
    %c0_i32_0 = arith.constant 0 : i32
    return %arg0, %c0_i32 : i32, i32
  }
}

</mosaic_0001>

<bundles_post_ra>
// kernel: discriminator_block.2
= control target key start
LH: loop header
LB: loop body
LE: loop exit
PB: predicated region body
PF: predicated region fallthrough
CT: control target
= control target key end

     0   :  { %s445_s9 = smov 0   ;;  %s491_s0 = inlined_call_operand.vmem [shape: bf16[64,128], index: 0, kind: input, shape index: {}]   ;;  %s492_s1 = inlined_call_operand.vmem [shape: bf16[128,128], index: 1, kind: input, shape index: {}]   ;;  %s493_s2 = inlined_call_operand.vmem [shape: f32[16,128], index: 2, kind: output, shape index: {}]  }
   0x1 LB: > { %s451_s10 = sadd.s32 4294967295, %s428_s9   ;;  %p358_p0 = scmp.ge.s32.totalorder %s428_s9, 1  ;;  %s428_s9 = sphi %s445_s9, %s12_s9  }
   0x2   : > { %p113_p1 = scmp.lt.s32.totalorder %s428_s9, 3 }
   0x4   : > { %p114_p2 = pnand %p358_p0, %p113_p1 }
   0x5   : > { %v412_v0 = vld [vmem:[%s492_s1] sm:$0xff] (!%p114_p2)   ;;  %s359_s13 = sshll.u32 (!%p114_p2), %s451_s10, 2  ;;  %v413_v1 = vld [vmem:[%s492_s1 + $0x8] sm:$0xff] (!%p114_p2)   ;;  %v414_v2 = vld [vmem:[%s492_s1 + $0x10] sm:$0xff] (!%p114_p2)   ;;  %p140_p4 = scmp.lt.s32.totalorder (!%p114_p2), %s451_s10, 1  ;;  %vm296_vm0 = vcmask (!%p114_p2), 1040384  }
   0x6   : > { %117 = sbr.rel (%p114_p2) target bundleno = 276 (0x114), region = 28  ;;  %p135_p3 = scmp.lt.s32.totalorder (!%p114_p2), %s359_s13, 7  ;;  %384 = vmatprep.subr.bf16.mxu0 (!%p114_p2), %v412_v0  ;;  %v415_v3 = vld [vmem:[%s492_s1 + $0x18] sm:$0xff] (!%p114_p2)   ;;  %v416_v5 = vld [vmem:[%s492_s1 + $0x20] sm:$0xff] (!%p114_p2)   ;;  %v417_v6 = vld [vmem:[%s492_s1 + $0x28] sm:$0xff] (!%p114_p2)   ;;  %vm298_vm1 = vcmask (!%p114_p2), 1041408  }
   0x7   : > { %385 = vmatpush3.bf16.msra.mxu0 (!%p114_p2), %v412_v0  ;;  %v418_v7 = vld [vmem:[%s492_s1 + $0x30] sm:$0xff] (!%p114_p2)   ;;  %v419_v8 = vld [vmem:[%s492_s1 + $0x38] sm:$0xff] (!%p114_p2)  }
   0x8   : > { %386 = vmatprep.subr.bf16.mxu0 (!%p114_p2), %v413_v1 }
   0xb   : > { %387 = vmatpush3.bf16.msra.mxu0 (!%p114_p2), %v413_v1 }
   0xc   : > { %388 = vmatprep.subr.bf16.mxu0 (!%p114_p2), %v414_v2 }
   0xd   : > { %s495_s13 = smov (!%p135_p3, %s359_s13), 7  ;;  %s497_s10 = smov (!%p140_p4, %s451_s10), 1 }
   0xe   : > { %s360_s18 = sshll.u32 %s495_s13, 2  ;;  %s361_s4 = sshll.u32 %s497_s10, 3 }
   0xf   : > { %s138_s21 = scalar_lea.vmem %s491_s0, %s360_s18  ;;  %389 = vmatpush3.bf16.msra.mxu0 %v414_v2  ;;  %s143_s7 = scalar_lea.vmem %s493_s2, %s361_s4 }
  0x10   : > { %v420_v4 = vld [vmem:[%s138_s21] sm:$0xff]   ;;  %390 = vmatprep.subr.bf16.mxu0 %v415_v3  ;;  %v421_v9 = vld [vmem:[%s138_s21 + $0x8] sm:$0xff]  }
  0x11   : > { %400 = vmatprep.mubr.bf16.mxu0 %v420_v4 }
  0x13   : > { %391 = vmatpush3.bf16.msra.mxu0 %v415_v3 }
  0x14   : > { %392 = vmatprep.subr.bf16.mxu0 %v416_v5 }
  0x17   : > { %393 = vmatpush3.bf16.msra.mxu0 %v416_v5 }
  0x18   : > { %394 = vmatprep.subr.bf16.mxu0 %v417_v6 }
  0x1b   : > { %395 = vmatpush3.bf16.msra.mxu0 %v417_v6 }
  0x1c   : > { %396 = vmatprep.subr.bf16.mxu0 %v418_v7 }
  0x1f   : > { %397 = vmatpush3.bf16.msra.mxu0 %v418_v7 }
  0x20   : > { %398 = vmatprep.subr.bf16.mxu0 %v419_v8 }
  0x23   : > { %399 = vmatpush3.bf16.msra.mxu0 %v419_v8 }
  0x26   : > { %401 = vmatmul.mubr.bf16.vlgmr.msra.gmra.mrb[0].mxu0 %v421_v9 }
  0xf9   : > { %v402_v10 = vpop.f32.mrb[0].mxu0 }
  0xfa   : > { %v259_v11 = vpop.f32.mrb[1].mxu0  ;;  %v285_v17 = vmul.f32 %v402_v10, %v402_v10 }
  0xfb   : > { %v403_v12 = vpop.f32.mrb[2].mxu0  ;;  %v283_v14 = vmul.f32 %v259_v11, %v259_v11 }
  0xfc   : > { %v262_v13 = vpop.f32.mrb[3].mxu0  ;;  %v286_v20 = vmul.f32 %v403_v12, %v403_v12 }
  0xfd   : > { %v274_v15 = vadd.f32 %v262_v13, %v259_v11  ;;  %v284_v16 = vmul.f32 %v262_v13, %v262_v13 }
  0xff   : > { %v275_v18 = vadd.f32 %v402_v10, %v274_v15  ;;  %v287_v19 = vadd.f32 %v284_v16, %v283_v14 }
 0x101   : > { %v276_v21 = vadd.f32 %v403_v12, %v275_v18  ;;  %v288_v22 = vadd.f32 %v287_v19, %v285_v17 }
 0x103   : > { %v277_v23 = vrot.slane %v276_v21, 4  ;;  %v289_v24 = vadd.f32 %v288_v22, %v286_v20 }
 0x105   : > { %v278_v25 = vadd.f32 %v277_v23, %v276_v21  ;;  %v290_v26 = vrot.slane %v289_v24, 4 }
 0x107   : > { %v279_v27 = vrot.slane %v278_v25, 2  ;;  %v291_v28 = vadd.f32 %v290_v26, %v289_v24 }
 0x109   : > { %v280_v29 = vadd.f32 %v279_v27, %v278_v25  ;;  %v292_v30 = vrot.slane %v291_v28, 2 }
 0x10b   : > { %v281_v31 = vrot.slane %v280_v29, 1  ;;  %v293_v32 = vadd.f32 %v292_v30, %v291_v28 }
 0x10d   : > { %v294_v33 = vrot.slane %v293_v32, 1  ;;  %v282_v34 = vadd.f32 %v281_v31, %v280_v29 }
 0x10f   : > { %v295_v35 = vadd.f32 %v294_v33, %v293_v32 }
 0x111   : > { %v297_v36 = vsel %vm296_vm0, %v282_v34, %v295_v35 }
 0x112   : > { %v299_v37 = vsel %vm298_vm1, %v297_v36, 0.0 }
 0x113   : > { %300 = vst [vmem:[%s143_s7] sm:$0xff] %v299_v37 }
 0x114 PF: > { %s12_s9 = sadd.s32 1, %s428_s9  }
 0x115   : > { %p9_p5 = scmp.ge.s32.totalorder %s12_s9, 4  }
 0x117   :  { %11 = sbr.rel (!%p9_p5) target bundleno = 1 (0x1), region = 58 }

// kernel: discriminator_block.3
= control target key start
LH: loop header
LB: loop body
LE: loop exit
PB: predicated region body
PF: predicated region fallthrough
CT: control target
= control target key end

     0   :  { %s530_s15 = smov 0   ;;  %s581_s0 = inlined_call_operand.vmem [shape: bf16[64,128], index: 0, kind: input, shape index: {}]   ;;  %s582_s1 = inlined_call_operand.vmem [shape: bf16[128,128], index: 1, kind: input, shape index: {}]   ;;  %s583_s2 = inlined_call_operand.vmem [shape: f32[1,128], index: 2, kind: input, shape index: {}]   ;;  %s584_s3 = inlined_call_operand.vmem [shape: f32[1,128], index: 3, kind: input, shape index: {}]   ;;  %s585_s4 = inlined_call_operand.vmem [shape: f32[64,8], index: 4, kind: output, shape index: {}]  }
   0x1 LB: > { %s426_s16 = sadd.s32 4294967295, %s503_s15   ;;  %p430_p0 = scmp.ge.s32.totalorder %s503_s15, 1  ;;  %s503_s15 = sphi %s530_s15, %s14_s15  }
   0x2   : > { %p163_p1 = scmp.lt.s32.totalorder %s503_s15, 3 }
   0x4   : > { %p164_p2 = pnand %p430_p0, %p163_p1 }
   0x5   : > { %v487_v0 = vld [vmem:[%s582_s1] sm:$0xff] (!%p164_p2)   ;;  %s431_s19 = sshll.u32 (!%p164_p2), %s426_s16, 2  ;;  %v488_v1 = vld [vmem:[%s582_s1 + $0x8] sm:$0xff] (!%p164_p2)   ;;  %v489_v2 = vld [vmem:[%s582_s1 + $0x10] sm:$0xff] (!%p164_p2)   ;;  %vm365_vm1 = vcmask (!%p164_p2), 64512  }
   0x6   : > { %167 = sbr.rel (%p164_p2) target bundleno = 261 (0x105), region = 36  ;;  %p190_p3 = scmp.lt.s32.totalorder (!%p164_p2), %s431_s19, 7  ;;  %459 = vmatprep.subr.bf16.mxu0 (!%p164_p2), %v487_v0  ;;  %v490_v3 = vld [vmem:[%s582_s1 + $0x18] sm:$0xff] (!%p164_p2)   ;;  %v491_v5 = vld [vmem:[%s582_s1 + $0x20] sm:$0xff] (!%p164_p2)   ;;  %v492_v6 = vld [vmem:[%s582_s1 + $0x28] sm:$0xff] (!%p164_p2)  }
   0x7   : > { %460 = vmatpush3.bf16.msra.mxu0 (!%p164_p2), %v487_v0  ;;  %v493_v7 = vld [vmem:[%s582_s1 + $0x30] sm:$0xff] (!%p164_p2)   ;;  %v494_v8 = vld [vmem:[%s582_s1 + $0x38] sm:$0xff] (!%p164_p2)   ;;  %v445_v10 = vld [vmem:[%s583_s2] ss:$0 sm:$0xff] (!%p164_p2) }
   0x8   : > { %461 = vmatprep.subr.bf16.mxu0 (!%p164_p2), %v488_v1  ;;  %v446_v12 = vld [vmem:[%s584_s3] ss:$0 sm:$0xff] (!%p164_p2) }
   0xb   : > { %462 = vmatpush3.bf16.msra.mxu0 (!%p164_p2), %v488_v1 }
   0xc   : > { %463 = vmatprep.subr.bf16.mxu0 (!%p164_p2), %v489_v2 }
   0xd   : > { %s587_s19 = smov (!%p190_p3, %s431_s19), 7 }
   0xe   : > { %s432_s24 = sshll.u32 %s587_s19, 2  ;;  %s434_s17 = sshll.u32 %s587_s19, 3 }
   0xf   : > { %s193_s27 = scalar_lea.vmem %s581_s0, %s432_s24  ;;  %464 = vmatpush3.bf16.msra.mxu0 %v489_v2  ;;  %s199_s21 = scalar_lea.vmem %s585_s4, %s434_s17 }
  0x10   : > { %v495_v4 = vld [vmem:[%s193_s27] sm:$0xff]   ;;  %465 = vmatprep.subr.bf16.mxu0 %v490_v3  ;;  %v496_v9 = vld [vmem:[%s193_s27 + $0x8] sm:$0xff]  }
  0x11   : > { %475 = vmatprep.mubr.bf16.mxu0 %v495_v4 }
  0x13   : > { %466 = vmatpush3.bf16.msra.mxu0 %v490_v3 }
  0x14   : > { %467 = vmatprep.subr.bf16.mxu0 %v491_v5 }
  0x17   : > { %468 = vmatpush3.bf16.msra.mxu0 %v491_v5 }
  0x18   : > { %469 = vmatprep.subr.bf16.mxu0 %v492_v6 }
  0x1b   : > { %470 = vmatpush3.bf16.msra.mxu0 %v492_v6 }
  0x1c   : > { %471 = vmatprep.subr.bf16.mxu0 %v493_v7 }
  0x1f   : > { %472 = vmatpush3.bf16.msra.mxu0 %v493_v7 }
  0x20   : > { %473 = vmatprep.subr.bf16.mxu0 %v494_v8 }
  0x23   : > { %474 = vmatpush3.bf16.msra.mxu0 %v494_v8 }
  0x26   : > { %476 = vmatmul.mubr.bf16.vlgmr.msra.gmra.mrb[0].mxu0 %v496_v9 }
  0xf9   : > { %v477_v11 = vpop.f32.mrb[0].mxu0 }
  0xfa   : > { %v340_v13 = vmul.f32 %v477_v11, %v445_v10  ;;  %v316_v14 = vpop.f32.mrb[1].mxu0 }
  0xfb   : > { %v338_v15 = vmul.f32 %v445_v10, %v316_v14  ;;  %v478_v16 = vpop.f32.mrb[2].mxu0 }
  0xfc   : > { %v351_v17 = vadd.f32 %v446_v12, %v340_v13  ;;  %v341_v18 = vmul.f32 %v478_v16, %v445_v10  ;;  %v319_v19 = vpop.f32.mrb[3].mxu0 }
  0xfd   : > { %v349_v20 = vadd.f32 %v446_v12, %v338_v15  ;;  %v339_v21 = vmul.f32 %v445_v10, %v319_v19 }
  0xfe   : > { %v352_v22 = vadd.f32 %v446_v12, %v341_v18  ;;  %vm355_vm2 = vcmp.gt.f32.partialorder %v351_v17, 0.0  ;;  %v359_v25 = vmul.f32 0.01, %v351_v17 }
  0xff   : > { %vm353_vm0 = vcmp.gt.f32.partialorder %v349_v20, 0.0  ;;  %v357_v23 = vmul.f32 0.01, %v349_v20  ;;  %v350_v24 = vadd.f32 %v446_v12, %v339_v21 }
 0x100   : > { %v360_v27 = vmul.f32 0.01, %v352_v22  ;;  %vm356_vm4 = vcmp.gt.f32.partialorder %v352_v22, 0.0  ;;  %v363_v30 = vsel %vm355_vm2, %v351_v17, %v359_v25 }
 0x101   : > { %v361_v26 = vsel %vm353_vm0, %v349_v20, %v357_v23  ;;  %vm354_vm3 = vcmp.gt.f32.partialorder %v350_v24, 0.0  ;;  %v358_v28 = vmul.f32 0.01, %v350_v24  ;;  %368 = vst.msk [vmem:[%s199_s21 + $0x10] sm:$0xff] %vm365_vm1, %v363_v30 }
 0x102   : > { %366 = vst.msk [vmem:[%s199_s21] sm:$0xff] %vm365_vm1, %v361_v26  ;;  %v364_v31 = vsel %vm356_vm4, %v352_v22, %v360_v27 }
 0x103   : > { %v362_v29 = vsel %vm354_vm3, %v350_v24, %v358_v28  ;;  %369 = vst.msk [vmem:[%s199_s21 + $0x18] sm:$0xff] %vm365_vm1, %v364_v31 }
 0x104   : > { %367 = vst.msk [vmem:[%s199_s21 + $0x8] sm:$0xff] %vm365_vm1, %v362_v29 }
 0x105 PF: > { %s14_s15 = sadd.s32 1, %s503_s15  }
 0x106   : > { %p11_p4 = scmp.ge.s32.totalorder %s14_s15, 4  }
 0x108   :  { %13 = sbr.rel (!%p11_p4) target bundleno = 1 (0x1), region = 66 }

</bundles_post_ra>
